<compile_context>
chip_gen: v7x
topology: tpu7x:2x2x1
jax: 0.10.0
libtpu: 0.0.40
codegen_flags: <defaults>
</compile_context>

<pallas_src>
import functools
import math

import jax
import jax.numpy as jnp
from jax.experimental import pallas as pl
from jax.experimental.pallas import tpu as pltpu


def _round_up(a: int, b: int) -> int:
    return -(-a // b) * b


def _rmsnorm_kernel(x_ref, scale_ref, o_ref, *, eps: float):
    # Simple path: reduction over the full lane axis (width == dim).
    x = x_ref[...].astype(jnp.float32)
    ms = jnp.mean(x * x, axis=-1, keepdims=True)
    rrms = jax.lax.rsqrt(ms + eps)
    # Match PyTorch exactly: (x * rrms).to(x_dtype) * scale
    y = (x * rrms).astype(x_ref.dtype)
    o_ref[...] = (
        y.astype(jnp.float32) * scale_ref[...].astype(jnp.float32)
    ).astype(o_ref.dtype)


def _rmsnorm_fold_kernel(x_ref, scale_ref, seg_ref, o_ref, *, eps: float,
                         dim: int):
    # Folded path: k logical rows of length `dim` live along the lane axis.
    # Per-segment mean (broadcast back across its segment) via a small
    # block-diagonal matmul with the precomputed 0/1 `seg` matrix.
    x = x_ref[...].astype(jnp.float32)
    xx = x * x
    ms = jnp.dot(xx, seg_ref[...], preferred_element_type=jnp.float32,
                 precision=jax.lax.Precision.HIGHEST) * (1.0 / dim)
    rrms = jax.lax.rsqrt(ms + eps)
    y = (x * rrms).astype(x_ref.dtype)
    o_ref[...] = (
        y.astype(jnp.float32) * scale_ref[...].astype(jnp.float32)
    ).astype(o_ref.dtype)


def rmsnorm(x: jax.Array, scale: jax.Array, *, eps: float = 1e-6,
            target_tile_bytes: int | None = None) -> jax.Array:
    """RMSNorm over the last dimension.  x: (..., dim), scale: (dim,)."""
    dim = x.shape[-1]
    assert scale.shape == (dim,)

    orig_shape = x.shape
    rows = math.prod(orig_shape[:-1]) if len(orig_shape) > 1 else 1
    x2d = x.reshape(rows, dim)

    # PyTorch promotion: (x*rrms).to(x_dtype) * scale -> promoted dtype.
    out_dtype = jnp.promote_types(x.dtype, scale.dtype)

    # ---- Per-generation sizing -------------------------------------------
    try:
        vmem_cap = int(pltpu.get_tpu_info().vmem_capacity_bytes)
    except Exception:
        vmem_cap = 64 << 20  # conservative fallback: v7x per-TC VMEM
    if target_tile_bytes is None:
        # v7x (<=64 MiB VMEM/TC, 3.2 TB/s HBM): ~8 MiB input tiles.
        # v5e/v6e (128 MiB VMEM): ~12 MiB input tiles.
        target_tile_bytes = (8 << 20) if vmem_cap <= (64 << 20) else (12 << 20)

    # ---- Lane folding for narrow feature dims ------------------------------
    k = 1
    if dim < 128:
        k_cand = 128 // math.gcd(dim, 128)  # smallest k with k*dim % 128 == 0
        if k_cand > 1 and k_cand * dim <= 512 and rows % k_cand == 0:
            k = k_cand
    # TODO(synk): rows not divisible by k (or lcm(dim,128) > 512) fall back to
    # the unfolded path with lane-masked stores instead of padding the tail.
    width = k * dim
    rows_eff = rows // k
    x_in = x2d.reshape(rows_eff, width)
    scale_in = (jnp.tile(scale, k) if k > 1 else scale).reshape(1, width)

    # ---- Row-tile sizing ----------------------------------------------------
    x_itemsize = jnp.dtype(x.dtype).itemsize
    out_itemsize = jnp.dtype(out_dtype).itemsize
    sublane = max(8, 32 // x_itemsize)          # 8 / 16 / 32 rows per dtype pack
    width_pad = _round_up(width, 128)           # physical lane padding in VMEM

    # VMEM bytes per tile-row: double-buffered in + out tiles plus the
    # in-kernel f32 temporaries (x upcast, x*x, pre-scale y).
    bytes_per_row = width_pad * (2 * x_itemsize + 2 * out_itemsize + 3 * 4)
    fixed_vmem = ((2 * width * width * 4) if k > 1 else 0) \
        + 2 * width_pad * 4 + (2 << 20)
    vmem_budget = max(vmem_cap - (12 << 20), 16 << 20)

    rows_for_target = max(sublane, target_tile_bytes // (width_pad * x_itemsize))
    rows_for_vmem = max(sublane, (vmem_budget - fixed_vmem) // bytes_per_row)
    block_rows = min(rows_for_target, rows_for_vmem, rows_eff)

    if rows_eff <= sublane:
        block_rows = rows_eff                   # single full-extent block
    else:
        if rows_eff >= 2 * sublane:
            # Guarantee >= 2 grid steps so both v7x TensorCores get work.
            half = _round_up((rows_eff + 1) // 2, sublane)
            block_rows = min(block_rows, half)
        block_rows = max(sublane, (block_rows // sublane) * sublane)
    grid = pl.cdiv(rows_eff, block_rows)

    # Explicit scoped-VMEM budget, clamped below physical VMEM with headroom.
    need = block_rows * bytes_per_row + fixed_vmem
    vmem_limit = int(min(need + (4 << 20), vmem_cap - (8 << 20)))
    vmem_limit = max(vmem_limit, 16 << 20)

    # ---- pallas_call --------------------------------------------------------
    inputs = [x_in, scale_in]
    in_specs = [
        pl.BlockSpec((block_rows, width), lambda i: (i, 0)),
        pl.BlockSpec((1, width), lambda i: (0, 0)),
    ]
    if k > 1:
        seg = (jnp.arange(width)[:, None] // dim
               == jnp.arange(width)[None, :] // dim).astype(jnp.float32)
        inputs.append(seg)
        in_specs.append(pl.BlockSpec((width, width), lambda i: (0, 0)))
        kernel = functools.partial(_rmsnorm_fold_kernel, eps=eps, dim=dim)
    else:
        kernel = functools.partial(_rmsnorm_kernel, eps=eps)

    out = pl.pallas_call(
        kernel,
        out_shape=jax.ShapeDtypeStruct((rows_eff, width), out_dtype),
        grid_spec=pl.GridSpec(
            grid=(grid,),
            in_specs=in_specs,
            out_specs=pl.BlockSpec((block_rows, width), lambda i: (i, 0)),
        ),
        compiler_params=pltpu.CompilerParams(
            dimension_semantics=("parallel",),
            vmem_limit_bytes=vmem_limit,
        ),
    )(*inputs)

    return out.reshape(orig_shape)


if __name__ == "__main__":
    key = jax.random.PRNGKey(0)
    k1, k2, k3 = jax.random.split(key, 3)

    def _ref(x, scale, eps=1e-6):
        xf = x.astype(jnp.float32)
        rrms = jax.lax.rsqrt(jnp.mean(xf * xf, axis=-1, keepdims=True) + eps)
        return (xf * rrms).astype(x.dtype) * scale.reshape(
            (1,) * (x.ndim - 1) + (-1,))

    # Module-consistent small shape (batch=2, seq=8, hidden=32): folded path.
    x = jax.random.normal(k1, (2, 8, 32), dtype=jnp.float32)
    scale = jnp.ones((32,), dtype=jnp.float32)  # nn.Parameter(torch.ones(dim))
    y = jax.block_until_ready(rmsnorm(x, scale))
    assert y.shape == x.shape
    assert jnp.allclose(y, _ref(x, scale), atol=1e-5, rtol=1e-5)

    # Lane-dense dim=128 path with a non-trivial scale.
    x2 = jax.random.normal(k2, (4, 16, 128), dtype=jnp.float32)
    s2 = 0.5 + jax.random.uniform(k3, (128,), dtype=jnp.float32)
    y2 = jax.block_until_ready(rmsnorm(x2, s2))
    assert y2.shape == x2.shape
    assert jnp.allclose(y2, _ref(x2, s2), atol=1e-5, rtol=1e-5)

    # Narrow non-divisor-of-128 dim (96 -> k=4 fold, width=384): lane-dense.
    x3 = jax.random.normal(k2, (3, 8, 96), dtype=jnp.float32)
    s3 = jnp.ones((96,), dtype=jnp.float32)
    y3 = jax.block_until_ready(rmsnorm(x3, s3))
    assert y3.shape == x3.shape
    assert jnp.allclose(y3, _ref(x3, s3), atol=1e-5, rtol=1e-5)

    print("KERNEL_OK")
</pallas_src>

<mosaic_0001>
module attributes {stable_mosaic.version = 11 : i64} {
  func.func @_rmsnorm_fold_kernel(%arg0: i32, %arg1: memref<4x128xf32, #tpu.memory_space<vmem>>, %arg2: memref<1x128xf32, #tpu.memory_space<vmem>>, %arg3: memref<128x128xf32, #tpu.memory_space<vmem>>, %arg4: memref<4x128xf32, #tpu.memory_space<vmem>>) attributes {dimension_semantics = [#tpu.dimension_semantics<parallel>], iteration_bounds = array<i64: 1>, scalar_prefetch = 0 : i64, scratch_operands = 0 : i64, tpu.core_type = #tpu.core_type<tc>, window_params = [{transform_indices = @transform_0, window_bounds = array<i64: 4, 128>}, {pipeline_mode = #tpu.pipeline_mode<synchronous>, transform_indices = @transform_1, window_bounds = array<i64: 1, 128>}, {pipeline_mode = #tpu.pipeline_mode<synchronous>, transform_indices = @transform_2, window_bounds = array<i64: 128, 128>}, {transform_indices = @transform_3, window_bounds = array<i64: 4, 128>}]} {
    %c0 = arith.constant 0 : index
    %c0_0 = arith.constant 0 : index
    %0 = vector.load %arg1[%c0, %c0_0] : memref<4x128xf32, #tpu.memory_space<vmem>>, vector<4x128xf32>
    %1 = arith.mulf %0, %0 : vector<4x128xf32>
    %c0_1 = arith.constant 0 : index
    %c0_2 = arith.constant 0 : index
    %2 = vector.load %arg3[%c0_1, %c0_2] : memref<128x128xf32, #tpu.memory_space<vmem>>, vector<128x128xf32>
    %cst = arith.constant dense<0.000000e+00> : vector<4x128xf32>
    %3 = tpu.matmul %1, %2, %cst {dimension_numbers = #tpu.dot_dimension_numbers<[1], [0], [0], [1], [0, 0, 1, 1], [], []>, precision = #tpu.contract_precision<fp32>} : vector<4x128xf32>, vector<128x128xf32>, vector<4x128xf32> -> vector<4x128xf32>
    %cst_3 = arith.constant 3.125000e-02 : f32
    %4 = vector.broadcast %cst_3 : f32 to vector<4x128xf32>
    %5 = arith.mulf %3, %4 : vector<4x128xf32>
    %cst_4 = arith.constant 9.99999997E-7 : f32
    %6 = vector.broadcast %cst_4 : f32 to vector<4x128xf32>
    %7 = arith.addf %5, %6 : vector<4x128xf32>
    %8 = math.rsqrt %7 : vector<4x128xf32>
    %9 = arith.mulf %0, %8 : vector<4x128xf32>
    %c0_5 = arith.constant 0 : index
    %c0_6 = arith.constant 0 : index
    %10 = vector.load %arg2[%c0_5, %c0_6] : memref<1x128xf32, #tpu.memory_space<vmem>>, vector<1x128xf32>
    %11 = vector.broadcast %10 : vector<1x128xf32> to vector<4x128xf32>
    %12 = arith.mulf %9, %11 : vector<4x128xf32>
    %c0_7 = arith.constant 0 : index
    %c0_8 = arith.constant 0 : index
    %13 = vector.load %arg4[%c0_7, %c0_8] : memref<4x128xf32, #tpu.memory_space<vmem>>, vector<4x128xf32>
    tpu.vector_store %arg4[%c0_7, %c0_8], %12 {strides = array<i32>} : memref<4x128xf32, #tpu.memory_space<vmem>>, vector<4x128xf32>,
    return
  }
  func.func @transform_0(%arg0: i32) -> (i32, i32) {
    %c0_i32 = arith.constant 0 : i32
    %c0_i32_0 = arith.constant 0 : i32
    return %arg0, %c0_i32 : i32, i32
  }
  func.func @transform_1(%arg0: i32) -> (i32, i32) {
    %c0_i32 = arith.constant 0 : i32
    %c0_i32_0 = arith.constant 0 : i32
    %c0_i32_1 = arith.constant 0 : i32
    return %c0_i32, %c0_i32_0 : i32, i32
  }
  func.func @transform_2(%arg0: i32) -> (i32, i32) {
    %c0_i32 = arith.constant 0 : i32
    %c0_i32_0 = arith.constant 0 : i32
    %c0_i32_1 = arith.constant 0 : i32
    return %c0_i32, %c0_i32_0 : i32, i32
  }
  func.func @transform_3(%arg0: i32) -> (i32, i32) {
    %c0_i32 = arith.constant 0 : i32
    %c0_i32_0 = arith.constant 0 : i32
    return %arg0, %c0_i32 : i32, i32
  }
}

</mosaic_0001>

<bundles_post_ra>
// kernel: tpu_custom_call.1
= control target key start
LH: loop header
LB: loop body
LE: loop exit
PB: predicated region body
PF: predicated region fallthrough
CT: control target
= control target key end

     0   :  { %8 = vsyncpa [#allocation3], 0  ;;  %s1603_s0 = inlined_call_operand.hbm [shape: f32[4,128], index: 0, kind: input, shape index: {}]   ;;  %s1604_s1 = inlined_call_operand.vmem [shape: f32[1,128], index: 1, kind: input, shape index: {}]   ;;  %s1605_s2 = inlined_call_operand.hbm [shape: f32[128,128], index: 2, kind: input, shape index: {}]   ;;  %s1606_s3 = inlined_call_operand.hbm [shape: f32[4,128], index: 3, kind: output, shape index: {}]  }
   0x1   :  { %9 = vsyncpa [#allocation6], 0 }
   0x2   :  { %10 = vsyncpa [#allocation4], 0  ;;  %s1277_s12 = smov [#allocation2]   ;;  %s1278_s14 = smov [#allocation5]  }
   0x3   :  { %s17_s13 = sshll.u32 %s1277_s12, 4  ;;  %s28_s15 = sshll.u32 %s1278_s14, 4  ;;  %s18_s13 = int_to_ptr.vmem [resolvable:$true] %s17_s13  ;;  %s1305_s15 = int_to_ptr.vmem [resolvable:$true] %s28_s15 }
   0x4   :  { %s1205_s18 = scalar_lea.hbm %s1603_s0, 64 }
   0x5   :  { %p1206_p0 = scmp.ne.s32.totalorder %s1603_s0, %s1205_s18  ;;  %p1209_p1 = scmp.lt.u32.totalorder %s1205_s18, %s1603_s0 }
   0x7   :  { %p1211_p2 = pnand %p1209_p1, %p1206_p0 }
   0x9   :  { %1214 = shalt.err (!%p1211_p2)
}
   0xa   :  { %s1215_s23 = scalar_lea.vmem %s18_s13, 64  ;;  %p1220_p4 = scmp.lt.s32.totalorder %s18_s13, %s18_s13 }
   0xb   :  { %p1216_p3 = scmp.ne.s32.totalorder %s18_s13, %s1215_s23  ;;  %p1221_p5 = scmp.lt.s32.totalorder %s1215_s23, %s1215_s23 }
   0xd   :  { %p1222_p6 = por %p1221_p5, %p1220_p4 }
   0xf   :  { %p1223_p7 = pnand %p1222_p6, %p1216_p3 }
  0x11   :  { %1226 = shalt.err (!%p1223_p7)
}
  0x12   :  { %20 = dma.hbm_to_vmem [thread:$0]  %s1603_s0, 64, %s18_s13, [#allocation3]  }
  0x13   :  { %s1227_s28 = scalar_lea.hbm %s1605_s2, 2048 }
  0x14   :  { %p1228_p8 = scmp.ne.s32.totalorder %s1605_s2, %s1227_s28  ;;  %p1231_p9 = scmp.lt.u32.totalorder %s1227_s28, %s1605_s2 }
  0x16   :  { %p1233_p10 = pnand %p1231_p9, %p1228_p8 }
  0x18   :  { %1236 = shalt.err (!%p1233_p10)
}
  0x19   :  { %s1237_s6 = scalar_lea.vmem %s1305_s15, 2048  ;;  %p1242_p12 = scmp.lt.s32.totalorder %s1305_s15, %s1305_s15 }
  0x1a   :  { %p1238_p11 = scmp.ne.s32.totalorder %s1305_s15, %s1237_s6  ;;  %p1243_p13 = scmp.lt.s32.totalorder %s1237_s6, %s1237_s6 }
  0x1c   :  { %p1244_p0 = por %p1243_p13, %p1242_p12 }
  0x1e   :  { %p1245_p1 = pnand %p1244_p0, %p1238_p11 }
  0x20   :  { %1248 = shalt.err (!%p1245_p1)
}
  0x21   :  { %s1279_s0 = smov 128   ;;  %s1280_s7 = smov 8  }
  0x22   :  { %34 = dma.hbm_to_vmem [thread:$0]  %s1605_s2, 2048, %s1305_s15, [#allocation6], %s1279_s0, %s1279_s0, %s1280_s7  }
  0x23   :  { %1271 = dma.done.wait [#allocation3], 64  }
  0x24   :  { %1272 = vsyncadd [#allocation3], 4294967232 }
  0x25   :  { %1273 = dma.done.wait [#allocation6], 2048  }
  0x26   :  { %1274 = vsyncadd [#allocation6], 4294965248  ;;  %v1281_v0 = vmov 0.0|0.0   ;;  %vm1282_vm0 = vmmov 0   ;;  %v1283_v1 = vmov 0.0   ;;  %v43_v2 = vld [vmem:[#allocation5] sm:$0xff] }
  0x27   :  { %1042 = vmatprep.subr.bf16.mxu1 %v1281_v0  ;;  %1114 = vmatprep.subr.bf16.mxu0 %v1281_v0  ;;  %v44_v3 = vld [vmem:[#allocation5 + $0x8] sm:$0xff]  ;;  %v45_v4 = vld [vmem:[#allocation5 + $0x10] sm:$0xff]  ;;  %v60_v5 = vand.u32 4294901760, %v43_v2  ;;  %v46_v7 = vld [vmem:[#allocation5 + $0x18] sm:$0xff]  ;;  %s1284_s11 = smov [#allocation7]  }
  0x28   :  { %864 = vmatprep.mubr.msk.f32.mxu1 %vm1282_vm0, %v1283_v1  ;;  %969 = vmatprep.mubr.msk.f32.mxu0 %vm1282_vm0, %v1283_v1  ;;  %v63_v6 = vand.u32 4294901760, %v44_v3  ;;  %v66_v8 = vand.u32 4294901760, %v45_v4  ;;  %v69_v9 = vand.u32 4294901760, %v46_v7  ;;  %v47_v10 = vld [vmem:[#allocation5 + $0x20] sm:$0xff]  ;;  %v48_v11 = vld [vmem:[#allocation5 + $0x28] sm:$0xff]  ;;  %v49_v16 = vld [vmem:[#allocation5 + $0x30] sm:$0xff] }
  0x29   :  { %v72_v14 = vand.u32 4294901760, %v47_v10  ;;  %v75_v15 = vand.u32 4294901760, %v48_v11  ;;  %v50_v17 = vld [vmem:[#allocation5 + $0x38] sm:$0xff]  ;;  %v78_v19 = vand.u32 4294901760, %v49_v16  ;;  %v1358_v22 = vld [vmem:[#allocation5 + $0x40] sm:$0xff]  ;;  %v1360_v23 = vld [vmem:[#allocation5 + $0x48] sm:$0xff]  ;;  %v1376_v30 = vsub.f32 %v43_v2, %v60_v5 }
  0x2a   :  { %v1342_v12 = vpack.c.bf16 %v63_v6, %v60_v5  ;;  %v1346_v13 = vpack.c.bf16 %v69_v9, %v66_v8  ;;  %v81_v20 = vand.u32 4294901760, %v50_v17  ;;  %v1354_v21 = vld [vmem:[#allocation2] sm:$0xf]  ;;  %v84_v26 = vand.u32 4294901760, %v1358_v22  ;;  %v1372_v28 = vld [vmem:[#allocation5 + $0x50] sm:$0xff]  ;;  %v1388_v36 = vld [vmem:[#allocation5 + $0x60] sm:$0xff] }
  0x2b   :  { %v1352_v18 = vpack.c.bf16 %v75_v15, %v72_v14  ;;  %v42_v24 = vmul.f32 %v1354_v21, %v1354_v21  ;;  %v87_v27 = vand.u32 4294901760, %v1360_v23  ;;  %v1374_v29 = vld [vmem:[#allocation5 + $0x58] sm:$0xff]  ;;  %v1380_v32 = vsub.f32 %v44_v3, %v63_v6  ;;  %v1392_v37 = vld [vmem:[#allocation5 + $0x68] sm:$0xff]  ;;  %v1411_v44 = vld [vmem:[#allocation5 + $0x70] sm:$0xff]  ;;  %s719_s12 = sshll.u32 %s1284_s11, 4  ;;  %s720_s12 = int_to_ptr.vmem [resolvable:$true] %s719_s12 }
  0x2c   :  { %1044 = vmatpush3.bf16.msra.mxu1 %v1342_v12  ;;  %1116 = vmatpush3.bf16.msra.mxu0 %v1342_v12  ;;  %v1366_v25 = vpack.c.bf16 %v81_v20, %v78_v19  ;;  %v90_v34 = vand.u32 4294901760, %v1372_v28  ;;  %v93_v35 = vand.u32 4294901760, %v1374_v29  ;;  %v1394_v38 = vsub.f32 %v45_v4, %v66_v8  ;;  %v1413_v45 = vld [vmem:[#allocation5 + $0x78] sm:$0xff]  ;;  %s1249_s13 = scalar_lea.vmem %s720_s12, 64  ;;  %p1254_p3 = scmp.lt.s32.totalorder %s720_s12, %s720_s12 }
  0x2d   :  { %1045 = vmatprep.subr.bf16.mxu1 %v1281_v0  ;;  %1117 = vmatprep.subr.bf16.mxu0 %v1281_v0  ;;  %v1378_v31 = vand.u32 4294901760, %v42_v24  ;;  %v1384_v33 = vpack.c.bf16 %v87_v27, %v84_v26  ;;  %v1396_v39 = vsub.f32 %v46_v7, %v69_v9  ;;  %v96_v40 = vand.u32 4294901760, %v1388_v36  ;;  %p1250_p2 = scmp.ne.s32.totalorder %s720_s12, %s1249_s13  ;;  %p1255_p4 = scmp.lt.s32.totalorder %s1249_s13, %s1249_s13 }
  0x2e   :  { %v1408_v42 = vpack.c.bf16 %v93_v35, %v90_v34  ;;  %v99_v43 = vand.u32 4294901760, %v1392_v37  ;;  %v153_v46 = vand.u32 4294901760, %v1376_v30  ;;  %v160_v47 = vand.u32 4294901760, %v1380_v32 }
  0x2f   :  { %v1400_v41 = vsub.f32 %v42_v24, %v1378_v31  ;;  %v1419_v48 = vsub.f32 %v47_v10, %v72_v14  ;;  %v1421_v49 = vsub.f32 %v48_v11, %v75_v15  ;;  %v102_v50 = vand.u32 4294901760, %v1411_v44  ;;  %p1256_p5 = por %p1255_p4, %p1254_p3 }
  0x30   :  { %1047 = vmatpush3.bf16.msra.mxu1 %v1346_v13  ;;  %1119 = vmatpush3.bf16.msra.mxu0 %v1346_v13  ;;  %v105_v51 = vand.u32 4294901760, %v1413_v45  ;;  %v167_v53 = vand.u32 4294901760, %v1394_v38  ;;  %v1433_v54 = vpack.c.bf16 %v99_v43, %v96_v40  ;;  %v154_v55 = vsub.f32 %v1376_v30, %v153_v46 }
  0x31   :  { %1048 = vmatprep.subr.bf16.mxu1 %v1281_v0  ;;  %1120 = vmatprep.subr.bf16.mxu0 %v1281_v0  ;;  %v142_v52 = vand.u32 4294901760, %v1400_v41  ;;  %v161_v56 = vsub.f32 %v1380_v32, %v160_v47  ;;  %v174_v57 = vand.u32 4294901760, %v1396_v39  ;;  %v1440_v58 = vsub.f32 %v49_v16, %v78_v19  ;;  %p1257_p6 = pnand %p1256_p5, %p1250_p2 }
  0x32   :  { %v1442_v59 = vsub.f32 %v50_v17, %v81_v20  ;;  %v168_v61 = vsub.f32 %v1394_v38, %v167_v53  ;;  %v181_v62 = vand.u32 4294901760, %v1419_v48  ;;  %v188_v63 = vand.u32 4294901760, %v1421_v49 }
  0x33   :  { %v143_v60 = vsub.f32 %v1400_v41, %v142_v52  ;;  %v1454_v2 = vpack.c.bf16 %v105_v51, %v102_v50  ;;  %v155_v3 = vand.u32 4294901760, %v154_v55  ;;  %v162_v4 = vand.u32 4294901760, %v161_v56 }
  0x34   :  { %1050 = vmatpush3.bf16.msra.mxu1 %v1352_v18  ;;  %1122 = vmatpush3.bf16.msra.mxu0 %v1352_v18  ;;  %v175_v5 = vsub.f32 %v1396_v39, %v174_v57  ;;  %v1460_v6 = vsub.f32 %v1358_v22, %v84_v26  ;;  %v1463_v7 = vsub.f32 %v1360_v23, %v87_v27  ;;  %v169_v10 = vand.u32 4294901760, %v168_v61 }
  0x35   :  { %1051 = vmatprep.subr.bf16.mxu1 %v1281_v0  ;;  %1123 = vmatprep.subr.bf16.mxu0 %v1281_v0  ;;  %v1139_v8 = vpack.c.bf16 %v160_v47, %v153_v46  ;;  %v144_v9 = vand.u32 4294901760, %v143_v60  ;;  %v182_v11 = vsub.f32 %v1419_v48, %v181_v62  ;;  %v189_v14 = vsub.f32 %v1421_v49, %v188_v63 }
  0x36   :  { %v1067_v15 = vpack.c.bf16 %v162_v4, %v155_v3  ;;  %v176_v16 = vand.u32 4294901760, %v175_v5  ;;  %v195_v17 = vand.u32 4294901760, %v1440_v58  ;;  %v202_v19 = vand.u32 4294901760, %v1442_v59 }
  0x37   :  { %v1476_v20 = vsub.f32 %v1372_v28, %v90_v34  ;;  %v1481_v22 = vsub.f32 %v1374_v29, %v93_v35  ;;  %v1142_v23 = vpack.c.bf16 %v174_v57, %v167_v53  ;;  %v183_v24 = vand.u32 4294901760, %v182_v11 }
  0x38   :  { %1053 = vmatpush3.bf16.msra.mxu1 %v1366_v25  ;;  %1125 = vmatpush3.bf16.msra.mxu0 %v1366_v25  ;;  %v190_v26 = vand.u32 4294901760, %v189_v14  ;;  %v209_v27 = vand.u32 4294901760, %v1460_v6  ;;  %v1070_v46 = vpack.c.bf16 %v176_v16, %v169_v10  ;;  %v196_v47 = vsub.f32 %v1440_v58, %v195_v17 }
  0x39   :  { %1054 = vmatprep.subr.bf16.mxu1 %v1281_v0  ;;  %1126 = vmatprep.subr.bf16.mxu0 %v1281_v0  ;;  %v203_v28 = vsub.f32 %v1442_v59, %v202_v19  ;;  %v216_v34 = vand.u32 4294901760, %v1463_v7  ;;  %v1492_v29 = vsub.f32 %v1388_v36, %v96_v40  ;;  %v1497_v35 = vsub.f32 %v1392_v37, %v99_v43 }
  0x3a   :  { %v1145_v53 = vpack.c.bf16 %v188_v63, %v181_v62  ;;  %v210_v55 = vsub.f32 %v1460_v6, %v209_v27  ;;  %v223_v56 = vand.u32 4294901760, %v1476_v20  ;;  %v197_v36 = vand.u32 4294901760, %v196_v47 }
  0x3b   :  { %v204_v40 = vand.u32 4294901760, %v203_v28  ;;  %v217_v57 = vsub.f32 %v1463_v7, %v216_v34  ;;  %v230_v37 = vand.u32 4294901760, %v1481_v22  ;;  %v1512_v43 = vsub.f32 %v1411_v44, %v102_v50 }
  0x3c   :  { %1056 = vmatpush3.bf16.msra.mxu1 %v1384_v33  ;;  %1128 = vmatpush3.bf16.msra.mxu0 %v1384_v33  ;;  %v1517_v60 = vsub.f32 %v1413_v45, %v105_v51  ;;  %v1148_v61 = vpack.c.bf16 %v202_v19, %v195_v17  ;;  %v211_v62 = vand.u32 4294901760, %v210_v55  ;;  %v224_v63 = vsub.f32 %v1476_v20, %v223_v56 }
  0x3d   :  { %1057 = vmatprep.subr.bf16.mxu1 %v1281_v0  ;;  %1129 = vmatprep.subr.bf16.mxu0 %v1281_v0  ;;  %v237_v3 = vand.u32 4294901760, %v1492_v29  ;;  %v1076_v4 = vpack.c.bf16 %v204_v40, %v197_v36  ;;  %v218_v5 = vand.u32 4294901760, %v217_v57  ;;  %v244_v44 = vand.u32 4294901760, %v1497_v35 }
  0x3e   :  { %v1151_v45 = vpack.c.bf16 %v216_v34, %v209_v27  ;;  %v225_v50 = vand.u32 4294901760, %v224_v63  ;;  %v1154_v16 = vpack.c.bf16 %v230_v37, %v223_v56  ;;  %v1094_v55 = vpack.c.bf16 %v1396_v39, %v1394_v38 }
  0x3f   :  { %v238_v51 = vsub.f32 %v1492_v29, %v237_v3  ;;  %v1079_v10 = vpack.c.bf16 %v218_v5, %v211_v62  ;;  %v245_v14 = vsub.f32 %v1497_v35, %v244_v44 }
  0x40   :  { %1059 = vmatpush3.bf16.msra.mxu1 %v1408_v42  ;;  %1131 = vmatpush3.bf16.msra.mxu0 %v1408_v42 }
  0x41   :  { %1060 = vmatprep.subr.bf16.mxu1 %v1281_v0  ;;  %1132 = vmatprep.subr.bf16.mxu0 %v1281_v0  ;;  %v239_v17 = vand.u32 4294901760, %v238_v51 }
  0x44   :  { %1062 = vmatpush3.bf16.msra.mxu1 %v1433_v54  ;;  %1134 = vmatpush3.bf16.msra.mxu0 %v1433_v54 }
  0x45   :  { %1063 = vmatprep.subr.bf16.mxu1 %v1281_v0  ;;  %1135 = vmatprep.subr.bf16.mxu0 %v1281_v0 }
  0x48   :  { %1065 = vmatpush3.bf16.msra.mxu1 %v1454_v2  ;;  %1137 = vmatpush3.bf16.msra.mxu0 %v1454_v2 }
  0x49   :  { %1066 = vmatprep.subr.bf16.mxu1 %v1281_v0  ;;  %1138 = vmatprep.subr.bf16.mxu0 %v1281_v0 }
  0x4b   :  { %865 = vmatmul.mubr.f32.vlgmr.msra.gmra.mrb[0].mxu1 %v144_v9  ;;  %970 = vmatmul.mubr.f32.vlgmr.msra.gmra.mrb[0].mxu0 %v142_v52  ;;  %v1073_v52 = vpack.c.bf16 %v190_v26, %v183_v24  ;;  %v251_v9 = vand.u32 4294901760, %v1512_v43 }
  0x4c   :  { %1068 = vmatpush3.bf16.msra.mxu1 %v1067_v15  ;;  %1140 = vmatpush3.bf16.msra.mxu0 %v1139_v8  ;;  %v231_v8 = vsub.f32 %v1481_v22, %v230_v37  ;;  %v258_v15 = vand.u32 4294901760, %v1517_v60 }
  0x4d   :  { %1069 = vmatprep.subr.bf16.mxu1 %v1281_v0  ;;  %1141 = vmatprep.subr.bf16.mxu0 %v1281_v0  ;;  %v252_v24 = vsub.f32 %v1512_v43, %v251_v9 }
  0x4e   :  { %899 = vmatprep.mubr.msk.f32.mxu1 %vm1282_vm0, %v1283_v1  ;;  %1004 = vmatprep.mubr.msk.f32.mxu0 %vm1282_vm0, %v1283_v1  ;;  %v232_v11 = vand.u32 4294901760, %v231_v8  ;;  %v259_v26 = vsub.f32 %v1517_v60, %v258_v15 }
  0x4f   :  { %v253_v47 = vand.u32 4294901760, %v252_v24 }
  0x50   :  { %1071 = vmatpush3.bf16.msra.mxu1 %v1070_v46  ;;  %1143 = vmatpush3.bf16.msra.mxu0 %v1142_v23  ;;  %v1082_v19 = vpack.c.bf16 %v232_v11, %v225_v50  ;;  %v246_v23 = vand.u32 4294901760, %v245_v14  ;;  %v1157_v46 = vpack.c.bf16 %v244_v44, %v237_v3  ;;  %v260_v28 = vand.u32 4294901760, %v259_v26 }
  0x51   :  { %1072 = vmatprep.subr.bf16.mxu1 %v1281_v0  ;;  %1144 = vmatprep.subr.bf16.mxu0 %v1281_v0 }
  0x52   :  { %v1085_v27 = vpack.c.bf16 %v246_v23, %v239_v17  ;;  %v1088_v34 = vpack.c.bf16 %v260_v28, %v253_v47 }
  0x54   :  { %1074 = vmatpush3.bf16.msra.mxu1 %v1073_v52  ;;  %1146 = vmatpush3.bf16.msra.mxu0 %v1145_v53  ;;  %v1160_v52 = vpack.c.bf16 %v258_v15, %v251_v9  ;;  %v1091_v53 = vpack.c.bf16 %v1380_v32, %v1376_v30  ;;  %v1097_v30 = vpack.c.bf16 %v1421_v49, %v1419_v48 }
  0x55   :  { %1075 = vmatprep.subr.bf16.mxu1 %v1281_v0  ;;  %1147 = vmatprep.subr.bf16.mxu0 %v1281_v0 }
  0x58   :  { %1077 = vmatpush3.bf16.msra.mxu1 %v1076_v4  ;;  %1149 = vmatpush3.bf16.msra.mxu0 %v1148_v61 }
  0x59   :  { %1078 = vmatprep.subr.bf16.mxu1 %v1281_v0  ;;  %1150 = vmatprep.subr.bf16.mxu0 %v1281_v0 }
  0x5c   :  { %1080 = vmatpush3.bf16.msra.mxu1 %v1079_v10  ;;  %1152 = vmatpush3.bf16.msra.mxu0 %v1151_v45 }
  0x5d   :  { %1081 = vmatprep.subr.bf16.mxu1 %v1281_v0  ;;  %1153 = vmatprep.subr.bf16.mxu0 %v1281_v0 }
  0x60   :  { %1083 = vmatpush3.bf16.msra.mxu1 %v1082_v19  ;;  %1155 = vmatpush3.bf16.msra.mxu0 %v1154_v16 }
  0x61   :  { %1084 = vmatprep.subr.bf16.mxu1 %v1281_v0  ;;  %1156 = vmatprep.subr.bf16.mxu0 %v1281_v0 }
  0x64   :  { %1086 = vmatpush3.bf16.msra.mxu1 %v1085_v27  ;;  %1158 = vmatpush3.bf16.msra.mxu0 %v1157_v46 }
  0x65   :  { %1087 = vmatprep.subr.bf16.mxu1 %v1281_v0  ;;  %1159 = vmatprep.subr.bf16.mxu0 %v1281_v0 }
  0x68   :  { %1089 = vmatpush3.bf16.msra.mxu1 %v1088_v34  ;;  %1161 = vmatpush3.bf16.msra.mxu0 %v1160_v52 }
  0x69   :  { %1090 = vmatprep.subr.bf16.mxu1 %v1281_v0  ;;  %1162 = vmatprep.subr.bf16.mxu0 %v1281_v0 }
  0x6b   :  { %900 = vmatmul.mubr.f32.vlgmr.msra.gmra.mrb[0].mxu1 %v1378_v31  ;;  %1005 = vmatmul.mubr.f32.vlgmr.msra.gmra.mrb[0].mxu0 %v1378_v31 }
  0x6c   :  { %1092 = vmatpush3.bf16.msra.mxu1 %v1091_v53  ;;  %1164 = vmatpush3.bf16.msra.mxu0 %v1342_v12  ;;  %v1100_v12 = vpack.c.bf16 %v1442_v59, %v1440_v58 }
  0x6d   :  { %1093 = vmatprep.subr.bf16.mxu1 %v1281_v0  ;;  %1165 = vmatprep.subr.bf16.mxu0 %v1281_v0 }
  0x6e   :  { %934 = vmatprep.mubr.msk.f32.mxu1 %vm1282_vm0, %v1283_v1  ;;  %1039 = vmatprep.mubr.msk.f32.mxu0 %vm1282_vm0, %v1283_v1  ;;  %v1103_v1 = vpack.c.bf16 %v1463_v7, %v1460_v6 }
  0x70   :  { %1095 = vmatpush3.bf16.msra.mxu1 %v1094_v55  ;;  %1167 = vmatpush3.bf16.msra.mxu0 %v1346_v13  ;;  %v1106_v13 = vpack.c.bf16 %v1481_v22, %v1476_v20 }
  0x71   :  { %1096 = vmatprep.subr.bf16.mxu1 %v1281_v0  ;;  %1168 = vmatprep.subr.bf16.mxu0 %v1281_v0 }
  0x74   :  { %1098 = vmatpush3.bf16.msra.mxu1 %v1097_v30  ;;  %1170 = vmatpush3.bf16.msra.mxu0 %v1352_v18  ;;  %v1109_v18 = vpack.c.bf16 %v1497_v35, %v1492_v29 }
  0x75   :  { %1099 = vmatprep.subr.bf16.mxu1 %v1281_v0  ;;  %1171 = vmatprep.subr.bf16.mxu0 %v1281_v0 }
  0x78   :  { %1101 = vmatpush3.bf16.msra.mxu1 %v1100_v12  ;;  %1173 = vmatpush3.bf16.msra.mxu0 %v1366_v25  ;;  %v1112_v25 = vpack.c.bf16 %v1517_v60, %v1512_v43 }
  0x79   :  { %1102 = vmatprep.subr.bf16.mxu1 %v1281_v0  ;;  %1174 = vmatprep.subr.bf16.mxu0 %v1281_v0 }
  0x7c   :  { %1104 = vmatpush3.bf16.msra.mxu1 %v1103_v1  ;;  %1176 = vmatpush3.bf16.msra.mxu0 %v1384_v33 }
  0x7d   :  { %1105 = vmatprep.subr.bf16.mxu1 %v1281_v0  ;;  %1177 = vmatprep.subr.bf16.mxu0 %v1281_v0 }
  0x80   :  { %1107 = vmatpush3.bf16.msra.mxu1 %v1106_v13  ;;  %1179 = vmatpush3.bf16.msra.mxu0 %v1408_v42 }
  0x81   :  { %1108 = vmatprep.subr.bf16.mxu1 %v1281_v0  ;;  %1180 = vmatprep.subr.bf16.mxu0 %v1281_v0 }
  0x84   :  { %1110 = vmatpush3.bf16.msra.mxu1 %v1109_v18  ;;  %1182 = vmatpush3.bf16.msra.mxu0 %v1433_v54 }
  0x85   :  { %1111 = vmatprep.subr.bf16.mxu1 %v1281_v0  ;;  %1183 = vmatprep.subr.bf16.mxu0 %v1281_v0  ;;  %v729_v0 = vld [vmem:[%s1604_s1] ss:$0 sm:$0xff] }
  0x88   :  { %1113 = vmatpush3.bf16.msra.mxu1 %v1112_v25  ;;  %1185 = vmatpush3.bf16.msra.mxu0 %v1454_v2 }
  0x8b   :  { %935 = vmatmul.mubr.f32.vlgmr.msra.gmra.mrb[0].mxu1 %v1400_v41  ;;  %1040 = vmatmul.mubr.f32.vlgmr.msra.gmra.mrb[0].mxu0 %v1378_v31 }
 0x15e   :  { %v401_v32 = vpop.f32.mrb[0].mxu1  ;;  %v696_v33 = vpop.f32.mrb[0].mxu0 }
 0x15f   :  { %v1186_v38 = vadd.f32 %v696_v33, %v401_v32  ;;  %v936_v39 = vpop.f32.mrb[1].mxu1  ;;  %v1041_v42 = vpop.f32.mrb[1].mxu0 }
 0x161   :  { %v700_v48 = vmul.f32 0.03125, %v1186_v38 }
 0x163   :  { %v701_v49 = vadd.f32 1e-06, %v700_v48 }
 0x165   :  { %1203 = vrsqrt.f32 %v701_v49 }
 0x16f   :  { %v1204_v54 = vpop.eup %1203 }
 0x170   :  { %v703_v58 = vmul.f32 %v1204_v54, %v1354_v21 }
 0x172   :  { %v711_v41 = vmul.f32 %v729_v0, %v703_v58 }
 0x174   :  { %712 = vst [vmem:[#allocation7] sm:$0xf] %v711_v41 }
 0x175   :  { %1260 = shalt.err (!%p1257_p6)
}
 0x176   :  { %s1261_s16 = scalar_lea.hbm %s1606_s3, 64 }
 0x177   :  { %p1262_p7 = scmp.ne.s32.totalorder %s1606_s3, %s1261_s16  ;;  %p1265_p8 = scmp.lt.u32.totalorder %s1261_s16, %s1606_s3 }
 0x179   :  { %p1267_p9 = pnand %p1265_p8, %p1262_p7 }
 0x17b   :  { %1270 = shalt.err (!%p1267_p9)
}
 0x17c   :  { %722 = dma.vmem_to_hbm [thread:$0]  %s720_s12, 64, %s1606_s3, [#allocation4]  }
 0x17d   :  { %1275 = dma.done.wait [#allocation4], 64  }
 0x17e   :  { %1276 = vsyncadd [#allocation4], 4294967232 }
 0x17f   :  { %726 = vsyncpa [#allocation3], 1 }
 0x180   :  { %727 = vsyncpa [#allocation6], 1 }
 0x181   :  { %728 = vsyncpa [#allocation4], 1 }

</bundles_post_ra>
